<compile_context>
chip_gen: v5e
topology: v5e:2x2
jax: 0.10.0
libtpu: 0.0.40
codegen_flags: <defaults>
</compile_context>

<pallas_src>
import jax
import jax.numpy as jnp
from jax.experimental import pallas as pl
from jax.experimental.pallas import tpu as pltpu

LANE = 128


def _ceil_to(x, m):
    return -(-x // m) * m


def _make_kernel(d_pad: int, s_tile: int):
    """Fused kernel for lane-padded feature size d_pad and row tile s_tile."""
    d3 = 3 * d_pad

    def kernel(x_ref, wa_ref, wh_ref, beta_ref, out_ref, xh_ref):
        x = x_ref[...]                                          # (s_tile, 3Dp) bf16
        # (a) alpha pre-activations: one packed MXU dot (no zero block-diag).
        ya = jnp.dot(x, wa_ref[...], preferred_element_type=jnp.float32)
        # (b) h pre-activations: stack the three Dp lane-slices along sublanes
        #     and run a single (3*s_tile, Dp) @ (Dp, Dp) dot (shared w_hA).
        xh_ref[0:s_tile, :] = x[:, 0:d_pad]
        xh_ref[s_tile:2 * s_tile, :] = x[:, d_pad:2 * d_pad]
        xh_ref[2 * s_tile:3 * s_tile, :] = x[:, 2 * d_pad:d3]
        h3 = jnp.tanh(jnp.dot(xh_ref[...], wh_ref[...],
                              preferred_element_type=jnp.float32))  # (3*s_tile, Dp)
        # Elementwise gating in f32 (VPU/EUP).
        g = beta_ref[...] * jax.nn.sigmoid(ya)                  # (s_tile, 3Dp)
        fused = (g[:, 0:d_pad] * h3[0:s_tile, :]
                 + g[:, d_pad:2 * d_pad] * h3[s_tile:2 * s_tile, :]
                 + g[:, 2 * d_pad:d3] * h3[2 * s_tile:3 * s_tile, :])
        out_ref[...] = jax.nn.sigmoid(fused).astype(out_ref.dtype)

    return kernel


def pack_gated_fusion_params(params, compute_dtype=jnp.bfloat16):
    """One-time parameter packing (hoisted out of the per-call path).

    params:
      w_hA:        (dim, dim)     PyTorch Linear weight (out, in)  -- shared by h_A/h_B/h_L
      w_alpha_*:   (dim, 3*dim)   PyTorch Linear weight (out, in)
      w_A/w_B/w_L: (decode_length, dim)
    """
    D = params["w_hA"].shape[0]
    Dp = max(LANE, _ceil_to(D, LANE))

    def pad2(a, r, c):
        return jnp.pad(a, ((0, r - a.shape[0]), (0, c - a.shape[1])))

    # Shared h-projection weight (the module overwrites linear_h_A 3x; keep it).
    wh = pad2(jnp.transpose(params["w_hA"]).astype(jnp.float32), Dp, Dp)   # (Dp, Dp)

    def pad_alpha(w):
        # (D, 3D) torch (out,in) -> right-multiply form (3Dp, Dp), padded per
        # D-segment so rows line up with the per-stream lane padding of x_cat.
        wt = jnp.transpose(w).astype(jnp.float32)                          # (3D, D)
        blocks = [pad2(wt[i * D:(i + 1) * D, :], Dp, Dp) for i in range(3)]
        return jnp.concatenate(blocks, axis=0)                             # (3Dp, Dp)

    wa = jnp.concatenate([pad_alpha(params["w_alpha_A"]),
                          pad_alpha(params["w_alpha_B"]),
                          pad_alpha(params["w_alpha_L"])], axis=1)          # (3Dp, 3Dp)

    def pad_beta(w):
        return jnp.pad(w.astype(jnp.float32), ((0, 0), (0, Dp - D)))

    beta_full = jnp.concatenate([pad_beta(params["w_A"]),
                                 pad_beta(params["w_B"]),
                                 pad_beta(params["w_L"])], axis=1)          # (dec, 3Dp)

    return {
        "dim": D,
        "d_pad": Dp,
        "w_alpha": wa.astype(compute_dtype),     # (3Dp, 3Dp) bf16
        "w_h": wh.astype(compute_dtype),         # (Dp, Dp)   bf16
        "beta": beta_full,                       # (decode_length, 3Dp) f32, batch-invariant
        "compute_dtype": compute_dtype,
    }


def gated_fusion_forward(x_A, x_B, x_L, packed):
    B, S, D = x_A.shape
    assert D == packed["dim"], "feature dim mismatch vs packed params"
    Dp = packed["d_pad"]
    D3 = 3 * Dp
    cdt = packed["compute_dtype"]
    decode_length = packed["beta"].shape[0]
    if S > decode_length:
        raise ValueError(f"seq_len={S} exceeds decode_length={decode_length}")

    # Row tile: multiple of 16 (bf16 sublane packing), capped at 512.
    s_tile = min(512, max(16, _ceil_to(S, 16)))
    S_pad = _ceil_to(S, s_tile)
    S_tiles = S_pad // s_tile

    # ---- activations: (B,S,D) -> lane-padded, concat along lanes, row-padded,
    #      then flattened to (B*S_pad, 3Dp) bf16.
    def prep(x):
        x = x.astype(cdt)
        return jnp.pad(x, ((0, 0), (0, 0), (0, Dp - D))) if Dp != D else x

    x_cat = jnp.concatenate([prep(x_A), prep(x_B), prep(x_L)], axis=-1)     # (B,S,3Dp)
    x_cat = jnp.pad(x_cat, ((0, 0), (0, S_pad - S), (0, 0)))                # (B,S_pad,3Dp)
    x_flat = x_cat.reshape(B * S_pad, D3)

    # ---- beta: batch-invariant (S_pad, 3Dp) f32; NOT tiled over batch.
    beta = jnp.pad(packed["beta"][:S], ((0, S_pad - S), (0, 0)))            # (S_pad, 3Dp)

    out_dtype = x_A.dtype

    # ---- scoped-VMEM sizing (v5e default is ~16 MiB; give explicit headroom).
    cbytes = jnp.dtype(cdt).itemsize
    obytes = jnp.dtype(out_dtype).itemsize
    bytes_needed = (
        9 * Dp * Dp * cbytes            # w_alpha  (single-buffered)
        + Dp * Dp * cbytes              # w_h      (single-buffered)
        + 2 * s_tile * D3 * cbytes      # x tile   (double-buffered)
        + 2 * s_tile * D3 * 4           # beta tile (double-buffered, f32)
        + 2 * s_tile * Dp * obytes      # out tile (double-buffered)
        + 3 * s_tile * Dp * cbytes      # xh scratch
    )
    vmem_limit = int(min(128 * 1024 * 1024,
                         max(32 * 1024 * 1024, 2 * bytes_needed)))

    out = pl.pallas_call(
        _make_kernel(Dp, s_tile),
        out_shape=jax.ShapeDtypeStruct((B * S_pad, Dp), out_dtype),
        grid_spec=pltpu.PrefetchScalarGridSpec(
            num_scalar_prefetch=0,
            # Batch innermost: the beta block index only depends on `s`, so the
            # same beta block is reused (no re-DMA) across the whole batch.
            grid=(S_tiles, B),
            in_specs=[
                pl.BlockSpec((s_tile, D3), lambda s, b: (b * S_tiles + s, 0)),   # x
                pl.BlockSpec((D3, D3), lambda s, b: (0, 0),
                             pipeline_mode=pl.Buffered(1)),                      # W_alpha (const)
                pl.BlockSpec((Dp, Dp), lambda s, b: (0, 0),
                             pipeline_mode=pl.Buffered(1)),                      # W_h (const)
                pl.BlockSpec((s_tile, D3), lambda s, b: (s, 0)),                 # beta
            ],
            out_specs=pl.BlockSpec((s_tile, Dp), lambda s, b: (b * S_tiles + s, 0)),
            scratch_shapes=[pltpu.VMEM((3 * s_tile, Dp), cdt)],                  # stacked x for h-dot
        ),
        compiler_params=pltpu.CompilerParams(
            dimension_semantics=("parallel", "parallel"),
            vmem_limit_bytes=vmem_limit),
    )(x_flat, packed["w_alpha"], packed["w_h"], beta)

    # Drop row/lane padding and restore (B, S, D).
    return out.reshape(B, S_pad, Dp)[:, :S, :D]


def reference_forward(x_A, x_B, x_L, params):
    """Pure-JAX f32 reference mirroring the PyTorch module exactly."""
    B, S, D = x_A.shape
    beta_A = params["w_A"][None, :S, :]
    beta_B = params["w_B"][None, :S, :]
    beta_L = params["w_L"][None, :S, :]
    x = jnp.concatenate((x_A, x_B, x_L), axis=-1)
    alpha_A = jax.nn.sigmoid(x @ params["w_alpha_A"].T)
    alpha_B = jax.nn.sigmoid(x @ params["w_alpha_B"].T)
    alpha_L = jax.nn.sigmoid(x @ params["w_alpha_L"].T)
    h_A = jnp.tanh(x_A @ params["w_hA"].T)
    h_B = jnp.tanh(x_B @ params["w_hA"].T)
    h_L = jnp.tanh(x_L @ params["w_hA"].T)
    return jax.nn.sigmoid(beta_A * alpha_A * h_A
                          + beta_B * alpha_B * h_B
                          + beta_L * alpha_L * h_L)


if __name__ == "__main__":
    batch, seq_len, dim = 2, 8, 32
    n_position, encode_length = 200, 16
    decode_length = n_position - encode_length

    key = jax.random.PRNGKey(0)
    keys = jax.random.split(key, 10)
    params = {
        "w_hA":      0.1 * jax.random.normal(keys[0], (dim, dim), jnp.float32),
        "w_alpha_A": 0.1 * jax.random.normal(keys[1], (dim, 3 * dim), jnp.float32),
        "w_alpha_B": 0.1 * jax.random.normal(keys[2], (dim, 3 * dim), jnp.float32),
        "w_alpha_L": 0.1 * jax.random.normal(keys[3], (dim, 3 * dim), jnp.float32),
        # PyTorch inits these to zeros; use small deterministic values so the
        # elementwise gating path is actually exercised.
        "w_A":       0.1 * jax.random.normal(keys[4], (decode_length, dim), jnp.float32),
        "w_B":       0.1 * jax.random.normal(keys[5], (decode_length, dim), jnp.float32),
        "w_L":       0.1 * jax.random.normal(keys[6], (decode_length, dim), jnp.float32),
    }

    x_A = jax.random.normal(keys[7], (batch, seq_len, dim), jnp.float32)
    x_B = jax.random.normal(keys[8], (batch, seq_len, dim), jnp.float32)
    x_L = jax.random.normal(keys[9], (batch, seq_len, dim), jnp.float32)

    packed = pack_gated_fusion_params(params)          # one-time weight packing
    out = gated_fusion_forward(x_A, x_B, x_L, packed)
    out = jax.block_until_ready(out)

    ref = reference_forward(x_A, x_B, x_L, params)
    assert out.shape == (batch, seq_len, dim)
    max_err = float(jnp.max(jnp.abs(out - ref)))
    # Tolerance deliberately loosened vs the f32 reference: matmul operands are
    # bf16 (MXU-native); accumulation and gating remain f32.
    assert jnp.allclose(out, ref, atol=2e-2, rtol=2e-2), \
        f"mismatch vs reference, max abs err = {max_err}"

    print("KERNEL_OK")
</pallas_src>

<mosaic_0001>
module attributes {stable_mosaic.version = 11 : i64} {
  func.func @kernel(%arg0: i32, %arg1: i32, %arg2: memref<16x384xbf16, #tpu.memory_space<vmem>>, %arg3: memref<384x384xbf16, #tpu.memory_space<vmem>>, %arg4: memref<128x128xbf16, #tpu.memory_space<vmem>>, %arg5: memref<16x384xf32, #tpu.memory_space<vmem>>, %arg6: memref<16x128xf32, #tpu.memory_space<vmem>>, %arg7: memref<48x128xbf16, #tpu.memory_space<vmem>>) attributes {dimension_semantics = [#tpu.dimension_semantics<parallel>, #tpu.dimension_semantics<parallel>], iteration_bounds = array<i64: 1, 2>, scalar_prefetch = 0 : i64, scratch_operands = 1 : i64, tpu.core_type = #tpu.core_type<tc>, window_params = [{transform_indices = @transform_0, window_bounds = array<i64: 16, 384>}, {pipeline_mode = #tpu.pipeline_mode<synchronous>, transform_indices = @transform_1, window_bounds = array<i64: 384, 384>}, {pipeline_mode = #tpu.pipeline_mode<synchronous>, transform_indices = @transform_2, window_bounds = array<i64: 128, 128>}, {transform_indices = @transform_3, window_bounds = array<i64: 16, 384>}, {transform_indices = @transform_4, window_bounds = array<i64: 16, 128>}]} {
    %c0 = arith.constant 0 : index
    %c0_0 = arith.constant 0 : index
    %0 = vector.load %arg2[%c0, %c0_0] : memref<16x384xbf16, #tpu.memory_space<vmem>>, vector<16x384xbf16>
    %c0_1 = arith.constant 0 : index
    %c0_2 = arith.constant 0 : index
    %1 = vector.load %arg3[%c0_1, %c0_2] : memref<384x384xbf16, #tpu.memory_space<vmem>>, vector<384x384xbf16>
    %cst = arith.constant dense<0.000000e+00> : vector<16x384xf32>
    %2 = tpu.matmul %0, %1, %cst {dimension_numbers = #tpu.dot_dimension_numbers<[1], [0], [0], [1], [0, 0, 1, 1], [], []>} : vector<16x384xbf16>, vector<384x384xbf16>, vector<16x384xf32> -> vector<16x384xf32>
    %3 = vector.extract_strided_slice %0 {offsets = [0, 0], sizes = [16, 128], strides = [1, 1]} : vector<16x384xbf16> to vector<16x128xbf16>
    %c0_3 = arith.constant 0 : index
    %c0_4 = arith.constant 0 : index
    %4 = vector.load %arg7[%c0_3, %c0_4] : memref<48x128xbf16, #tpu.memory_space<vmem>>, vector<16x128xbf16>
    tpu.vector_store %arg7[%c0_3, %c0_4], %3 {strides = array<i32>} : memref<48x128xbf16, #tpu.memory_space<vmem>>, vector<16x128xbf16>,
    %5 = vector.extract_strided_slice %0 {offsets = [0, 128], sizes = [16, 128], strides = [1, 1]} : vector<16x384xbf16> to vector<16x128xbf16>
    %c16 = arith.constant 16 : index
    %c0_5 = arith.constant 0 : index
    %6 = vector.load %arg7[%c16, %c0_5] : memref<48x128xbf16, #tpu.memory_space<vmem>>, vector<16x128xbf16>
    tpu.vector_store %arg7[%c16, %c0_5], %5 {strides = array<i32>} : memref<48x128xbf16, #tpu.memory_space<vmem>>, vector<16x128xbf16>,
    %7 = vector.extract_strided_slice %0 {offsets = [0, 256], sizes = [16, 128], strides = [1, 1]} : vector<16x384xbf16> to vector<16x128xbf16>
    %c32 = arith.constant 32 : index
    %c0_6 = arith.constant 0 : index
    %8 = vector.load %arg7[%c32, %c0_6] : memref<48x128xbf16, #tpu.memory_space<vmem>>, vector<16x128xbf16>
    tpu.vector_store %arg7[%c32, %c0_6], %7 {strides = array<i32>} : memref<48x128xbf16, #tpu.memory_space<vmem>>, vector<16x128xbf16>,
    %c0_7 = arith.constant 0 : index
    %c0_8 = arith.constant 0 : index
    %9 = vector.load %arg7[%c0_7, %c0_8] : memref<48x128xbf16, #tpu.memory_space<vmem>>, vector<48x128xbf16>
    %c0_9 = arith.constant 0 : index
    %c0_10 = arith.constant 0 : index
    %10 = vector.load %arg4[%c0_9, %c0_10] : memref<128x128xbf16, #tpu.memory_space<vmem>>, vector<128x128xbf16>
    %cst_11 = arith.constant dense<0.000000e+00> : vector<48x128xf32>
    %11 = tpu.matmul %9, %10, %cst_11 {dimension_numbers = #tpu.dot_dimension_numbers<[1], [0], [0], [1], [0, 0, 1, 1], [], []>} : vector<48x128xbf16>, vector<128x128xbf16>, vector<48x128xf32> -> vector<48x128xf32>
    %12 = math.tanh %11 : vector<48x128xf32>
    %c0_12 = arith.constant 0 : index
    %c0_13 = arith.constant 0 : index
    %13 = vector.load %arg5[%c0_12, %c0_13] : memref<16x384xf32, #tpu.memory_space<vmem>>, vector<16x384xf32>
    %14 = arith.negf %2 : vector<16x384xf32>
    %15 = math.exp %14 : vector<16x384xf32>
    %cst_14 = arith.constant 1.000000e+00 : f32
    %16 = vector.broadcast %cst_14 : f32 to vector<16x384xf32>
    %17 = arith.addf %16, %15 : vector<16x384xf32>
    %18 = arith.divf %16, %17 : vector<16x384xf32>
    %19 = arith.mulf %13, %18 : vector<16x384xf32>
    %20 = vector.extract_strided_slice %19 {offsets = [0, 0], sizes = [16, 128], strides = [1, 1]} : vector<16x384xf32> to vector<16x128xf32>
    %21 = vector.extract_strided_slice %12 {offsets = [0, 0], sizes = [16, 128], strides = [1, 1]} : vector<48x128xf32> to vector<16x128xf32>
    %22 = arith.mulf %20, %21 : vector<16x128xf32>
    %23 = vector.extract_strided_slice %19 {offsets = [0, 128], sizes = [16, 128], strides = [1, 1]} : vector<16x384xf32> to vector<16x128xf32>
    %24 = vector.extract_strided_slice %12 {offsets = [16, 0], sizes = [16, 128], strides = [1, 1]} : vector<48x128xf32> to vector<16x128xf32>
    %25 = arith.mulf %23, %24 : vector<16x128xf32>
    %26 = arith.addf %22, %25 : vector<16x128xf32>
    %27 = vector.extract_strided_slice %19 {offsets = [0, 256], sizes = [16, 128], strides = [1, 1]} : vector<16x384xf32> to vector<16x128xf32>
    %28 = vector.extract_strided_slice %12 {offsets = [32, 0], sizes = [16, 128], strides = [1, 1]} : vector<48x128xf32> to vector<16x128xf32>
    %29 = arith.mulf %27, %28 : vector<16x128xf32>
    %30 = arith.addf %26, %29 : vector<16x128xf32>
    %31 = arith.negf %30 : vector<16x128xf32>
    %32 = math.exp %31 : vector<16x128xf32>
    %cst_15 = arith.constant 1.000000e+00 : f32
    %33 = vector.broadcast %cst_15 : f32 to vector<16x128xf32>
    %34 = arith.addf %33, %32 : vector<16x128xf32>
    %35 = arith.divf %33, %34 : vector<16x128xf32>
    %c0_16 = arith.constant 0 : index
    %c0_17 = arith.constant 0 : index
    %36 = vector.load %arg6[%c0_16, %c0_17] : memref<16x128xf32, #tpu.memory_space<vmem>>, vector<16x128xf32>
    tpu.vector_store %arg6[%c0_16, %c0_17], %35 {strides = array<i32>} : memref<16x128xf32, #tpu.memory_space<vmem>>, vector<16x128xf32>,
    return
  }
  func.func @transform_0(%arg0: i32, %arg1: i32) -> (i32, i32) {
    %c1_i32 = arith.constant 1 : i32
    %0 = arith.muli %arg1, %c1_i32 : i32
    %1 = arith.addi %0, %arg0 : i32
    %c0_i32 = arith.constant 0 : i32
    %c0_i32_0 = arith.constant 0 : i32
    return %1, %c0_i32 : i32, i32
  }
  func.func @transform_1(%arg0: i32, %arg1: i32) -> (i32, i32) {
    %c0_i32 = arith.constant 0 : i32
    %c0_i32_0 = arith.constant 0 : i32
    %c0_i32_1 = arith.constant 0 : i32
    return %c0_i32, %c0_i32_0 : i32, i32
  }
  func.func @transform_2(%arg0: i32, %arg1: i32) -> (i32, i32) {
    %c0_i32 = arith.constant 0 : i32
    %c0_i32_0 = arith.constant 0 : i32
    %c0_i32_1 = arith.constant 0 : i32
    return %c0_i32, %c0_i32_0 : i32, i32
  }
  func.func @transform_3(%arg0: i32, %arg1: i32) -> (i32, i32) {
    %c0_i32 = arith.constant 0 : i32
    %c0_i32_0 = arith.constant 0 : i32
    return %arg0, %c0_i32 : i32, i32
  }
  func.func @transform_4(%arg0: i32, %arg1: i32) -> (i32, i32) {
    %c1_i32 = arith.constant 1 : i32
    %0 = arith.muli %arg1, %c1_i32 : i32
    %1 = arith.addi %0, %arg0 : i32
    %c0_i32 = arith.constant 0 : i32
    %c0_i32_0 = arith.constant 0 : i32
    return %1, %c0_i32 : i32, i32
  }
}

</mosaic_0001>

<bundles_post_ra>
// kernel: tpu_custom_call.1
= control target key start
LH: loop header
LB: loop body
LE: loop exit
PB: predicated region body
PF: predicated region fallthrough
CT: control target
= control target key end

     0   :  { %s2508_s0 = inlined_call_operand.hbm [shape: bf16[32,384], index: 0, kind: input, shape index: {}]   ;;  %s2509_s1 = inlined_call_operand.hbm [shape: bf16[384,384], index: 1, kind: input, shape index: {}]   ;;  %s2510_s2 = inlined_call_operand.hbm [shape: bf16[128,128], index: 2, kind: input, shape index: {}]   ;;  %s2511_s3 = inlined_call_operand.hbm [shape: f32[16,384], index: 3, kind: input, shape index: {}]   ;;  %s2512_s4 = inlined_call_operand.hbm [shape: f32[32,128], index: 4, kind: output, shape index: {}]  }
   0x1   :  { %2514 = sst [smem:[#allocation16_spill]] %s2509_s1 }
   0x2   :  { %9 = vsyncpa [#allocation4], 0 }
   0x3   :  { %11 = vsyncpa [#allocation4 + $0x1], 0 }
   0x4   :  { %12 = vsyncpa [#allocation7], 0 }
   0x5   :  { %13 = vsyncpa [#allocation10], 0 }
   0x6   :  { %14 = vsyncpa [#allocation5], 0 }
   0x7   :  { %16 = vsyncpa [#allocation5 + $0x1], 0  ;;  %s2216_s15 = smov 0   ;;  %s2218_s16 = smov 0  }
   0x8   :  { %s2220_s17 = smov 0   ;;  %s2222_s18 = smov 0  }
   0x9   :  { %s2224_s19 = smov 0   ;;  %s2226_s20 = smov 0  }
   0xa LB: > { %s1361_s21 = sadd.s32 4294967295, %s2178_s20   ;;  %s1362_s22 = sadd.s32 4294967294, %s2178_s20   ;;  %s2178_s20 = sphi %s2226_s20, %s22_s20   ;;  %s2174_s19 = sphi %s2224_s19, %s2536_s19   ;;  %s2170_s18 = sphi %s2222_s18, %s2535_s18   ;;  %s2166_s17 = sphi %s2220_s17, %s2534_s17   ;;  %s2162_s16 = sphi %s2218_s16, %s2533_s16   ;;  %s2158_s15 = sphi %s2216_s15, %s2532_s15  }
   0xb   : > { %p56_p0 = scmp.ne.s32.totalorder %s2162_s16, %s2158_s15  ;;  %p2250_p1 = scmp.eq.s32.totalorder %s1361_s21, 0 }
   0xc   : > { %p2254_p2 = scmp.eq.s32.totalorder %s1361_s21, 1  ;;  %p156_p3 = scmp.eq.s32.totalorder %s1362_s22, 1 }
   0xd   : > { %p2260_p4 = por %p2250_p1, %p56_p0  ;;  %p1363_p5 = scmp.ge.s32.totalorder %s2178_s20, 1 }
   0xe   : > { %p2265_p6 = por %p156_p3, %p56_p0  ;;  %p163_p7 = scmp.lt.s32.totalorder %s2178_s20, 3 }
   0xf   : > { %s2519_s1 = sld [smem:[#allocation16_spill]]  ;;  %s2180_s5 = smov [#allocation6]  }
  0x10   : > { %p2273_p8 = pnand %p1363_p5, %p163_p7  ;;  %s176_s6 = sshll.u32 %s2180_s5, 4  ;;  %s177_s6 = int_to_ptr.vmem [resolvable:$true] %s176_s6 }
  0x11   : > { %p1367_p11 = scmp.ge.s32.totalorder %s2178_s20, 2  ;;  %s188_s10 = sshll.u32 %s2510_s2, 4  ;;  %s189_s10 = int_to_ptr.hbm [resolvable:$true] %s188_s10 }
  0x12   : > { %p1839_p9 = pneg %p2273_p8  ;;  %s2513_s11 = smov 192  }
  0x13   : > { %s2182_s12 = smov 12   ;;  %s2183_s13 = smov [#allocation8]  }
  0x14   : > { %p2281_p10 = pnand %p1839_p9, %p2250_p1  ;;  %s190_s14 = sshll.u32 %s2183_s13, 4  ;;  %s191_s14 = int_to_ptr.vmem [resolvable:$true] %s190_s14 }
  0x15   : > { %s174_s29 = sshll.u32 %s2519_s1, 4  ;;  %s2184_s21 = smov 64   ;;  %s175_s29 = int_to_ptr.hbm [resolvable:$true] %s174_s29 }
  0x16   : > { %1842 = dma.hbm_to_vmem [thread:$0]  (!%p2281_p10), %s175_s29, 9216, %s177_s6, [#allocation7], %s2513_s11, %s2513_s11, %s2182_s12  }
  0x17   : > { %s2185_s22 = smov 4   ;;  %s206_s5 = sshll.u32 %s2511_s3, 4  ;;  %s207_s5 = int_to_ptr.hbm [resolvable:$true] %s206_s5 }
  0x18   : > { %1845 = dma.hbm_to_vmem [thread:$0]  (!%p2281_p10), %s189_s10, 1024, %s191_s14, [#allocation7], %s2184_s21, %s2184_s21, %s2185_s22  }
  0x19   : > { %s2186_s29 = smov [#allocation9]   ;;  %s2187_s8 = smov 384  }
  0x1a   : > { %s208_s6 = sshll.u32 %s2186_s29, 4  ;;  %s2188_s9 = smov 24   ;;  %s209_s6 = int_to_ptr.vmem [resolvable:$true] %s208_s6 }
  0x1b   : > { %1848 = dma.hbm_to_vmem [thread:$0]  (!%p2281_p10), %s207_s5, 768, %s209_s6, [#allocation10], %s2187_s8, %s2187_s8, %s2188_s9  }
  0x1c   : > { %s43_s13 = sadd.s32 1, %s2166_s17  ;;  %s31_s11 = sadd.s32 1, %s2174_s19 }
  0x1d   : > { %p50_p12 = scmp.ne.s32.totalorder %s2166_s17, %s2162_s16  ;;  %p32_p13 = scmp.ge.s32.totalorder %s31_s11, 2 }
  0x1e   : > { %p51_p0 = scmp.eq.s32.totalorder %s2178_s20, 0  ;;  %p1860_p5 = scmp.lt.s32.totalorder %s2178_s20, 2 }
  0x1f   : > { %p2308_p3 = por %p2254_p2, %p50_p12  ;;  %s2538_s11 = smov (%p32_p13, %s31_s11), 0 }
  0x20   : > { %p52_p7 = por %p51_p0, %p50_p12  ;;  %s222_s14 = sand.u32 1, %s2166_s17  }
  0x21   : > { %s40_s21 = ssub.s32 %s2174_s19, %s2538_s11  ;;  %s1820_s7 = smul.u32 24, %s222_s14 }
  0x22   : > { %p41_p9 = scmp.eq.s32.totalorder %s40_s21, 0  ;;  %s1821_s22 = smul.u32 24, %s2174_s19 }
  0x23   : > { %p1850_p10 = pnand %p1860_p5, %p52_p7  ;;  %s226_s6 = scalar_lea.vmem [#allocation3], %s1820_s7 }
  0x24   : > { %s2320_s27 = scalar_select %p41_p9, %s2166_s17, %s43_s13  }
  0x25   : > { %s233_s24 = scalar_lea.hbm %s2508_s0, %s1821_s22  ;;  %s236_s8 = sshll.u32 %s226_s6, 4  ;;  %s237_s8 = int_to_ptr.vmem [resolvable:$true] %s236_s8 }
  0x26   : > { %s234_s29 = sshll.u32 %s233_s24, 4  ;;  %s223_s9 = scalar_lea.sflag [#allocation4], %s222_s14  ;;  %s235_s29 = int_to_ptr.hbm [resolvable:$true] %s234_s29 }
  0x27   : > { %s2523_s1 = smov 192   ;;  %248 = sbr.rel (%p2273_p8) target bundleno = 359 (0x167), region = 36 }
  0x28   : > { %1852 = dma.hbm_to_vmem [thread:$0]  (!%p1850_p10), %s235_s29, 384, %s237_s8, %s223_s9, %s2523_s1, %s2523_s1, %s2182_s12  }
  0x29   : > { %s2331_s13 = sand.u32 (!%p2273_p8), 1, %s2162_s16  }
  0x2a   : > { %s1822_s21 = smul.u32 (!%p2273_p8), 24, %s2331_s13  ;;  %s251_s22 = scalar_lea.sflag (!%p2273_p8), [#allocation4], %s2331_s13 }
  0x2c   : > { %s2335_s7 = scalar_lea.vmem [#allocation3], %s1822_s21 }
  0x2d   : > { %2141 = dma.done.wait (%p2260_p4), %s251_s22, 384  }
  0x2e   : > { %2143 = vsyncadd (%p2260_p4), %s251_s22, 4294966912 }
  0x2f   : > { %2145 = dma.done.wait (%p2250_p1), [#allocation7], 10240  }
  0x30   : > { %2147 = vsyncadd (%p2250_p1), [#allocation7], 4294957056 }
  0x31   : > { %2149 = dma.done.wait (%p2250_p1), [#allocation10], 768  }
  0x32   : > { %2151 = vsyncadd (%p2250_p1), [#allocation10], 4294966528  ;;  %v1474_v0 = vld [vmem:[#allocation6 + $0xa8] sm:$0xf]  ;;  %v1758_v1 = vld [vmem:[#allocation6 + $0xb0] sm:$0xf0] }
  0x33   : > { %v1570_v2 = vld [vmem:[#allocation6 + $0x168] sm:$0xf]  ;;  %v1475_v3 = vor.u32 %v1758_v1, %v1474_v0  ;;  %v1782_v4 = vld [vmem:[#allocation6 + $0x170] sm:$0xf0]  ;;  %v1462_v5 = vld [vmem:[#allocation6 + $0x90] sm:$0xf] }
  0x34   : > { %v1755_v6 = vld [vmem:[#allocation6 + $0x98] sm:$0xf0]  ;;  %v1571_v7 = vor.u32 %v1782_v4, %v1570_v2  ;;  %v1558_v8 = vld [vmem:[#allocation6 + $0x150] sm:$0xf]  ;;  %v1450_v11 = vld [vmem:[#allocation6 + $0x78] sm:$0xf] }
  0x35   : > { %v1779_v9 = vld [vmem:[#allocation6 + $0x158] sm:$0xf0]  ;;  %800 = vmatpush.bf16.msra.mxu0 %v1475_v3  ;;  %v1463_v10 = vor.u32 %v1755_v6, %v1462_v5  ;;  %v1752_v13 = vld [vmem:[#allocation6 + $0x80] sm:$0xf0]  ;;  %v1805_v14 = vld [vmem:[#allocation6 + $0x22c] sm:$0xf] }
  0x36   : > { %814 = vmatpush.bf16.msra.mxu2 %v1571_v7  ;;  %v1559_v12 = vor.u32 %v1779_v9, %v1558_v8  ;;  %v1668_v15 = vld [vmem:[#allocation6 + $0x234] sm:$0xf0]  ;;  %v1776_v17 = vld [vmem:[#allocation6 + $0x140] sm:$0xf0]  ;;  %v1802_v19 = vld [vmem:[#allocation6 + $0x214] sm:$0xf]  ;;  %v1451_v21 = vor.u32 %v1752_v13, %v1450_v11 }
  0x37   : > { %v1546_v16 = vld [vmem:[#allocation6 + $0x138] sm:$0xf]  ;;  %v1671_v18 = vor.u32 %v1805_v14, %v1668_v15  ;;  %v1656_v20 = vld [vmem:[#allocation6 + $0x21c] sm:$0xf0]  ;;  %v1749_v25 = vld [vmem:[#allocation6 + $0x68] sm:$0xf0] }
  0x38   : > { %v1438_v22 = vld [vmem:[#allocation6 + $0x60] sm:$0xf]  ;;  %v1659_v23 = vor.u32 %v1802_v19, %v1656_v20  ;;  %v1547_v24 = vor.u32 %v1776_v17, %v1546_v16  ;;  %v1799_v26 = vld [vmem:[#allocation6 + $0x1fc] sm:$0xf]  ;;  %v1644_v27 = vld [vmem:[#allocation6 + $0x204] sm:$0xf0] }
  0x39   : > { %801 = vmatpush.bf16.msra.mxu0 %v1463_v10  ;;  %870 = vmatpush.bf16.msra.mxu1 %v1671_v18  ;;  %v1534_v28 = vld [vmem:[#allocation6 + $0x120] sm:$0xf]  ;;  %v1773_v29 = vld [vmem:[#allocation6 + $0x128] sm:$0xf0]  ;;  %v1476_v31 = vld [vmem:[#allocation6 + $0xb4] sm:$0xf0]  ;;  %v1439_v32 = vor.u32 %v1749_v25, %v1438_v22  ;;  %v1647_v35 = vor.u32 %v1799_v26, %v1644_v27 }
  0x3a   : > { %815 = vmatpush.bf16.msra.mxu2 %v1559_v12  ;;  %v1757_v30 = vld [vmem:[#allocation6 + $0xac] sm:$0xf]  ;;  %v1426_v33 = vld [vmem:[#allocation6 + $0x48] sm:$0xf]  ;;  %v1746_v34 = vld [vmem:[#allocation6 + $0x50] sm:$0xf0]  ;;  %v1535_v37 = vor.u32 %v1773_v29, %v1534_v28 }
  0x3b   : > { %v1479_v36 = vor.u32 %v1757_v30, %v1476_v31  ;;  %v1796_v38 = vld [vmem:[#allocation6 + $0x1e4] sm:$0xf]  ;;  %v1632_v39 = vld [vmem:[#allocation6 + $0x1ec] sm:$0xf0]  ;;  %v1754_v40 = vld [vmem:[#allocation6 + $0x94] sm:$0xf]  ;;  %v1427_v45 = vor.u32 %v1746_v34, %v1426_v33 }
  0x3c   : > { %v1522_v41 = vld [vmem:[#allocation6 + $0x108] sm:$0xf]  ;;  %v1770_v42 = vld [vmem:[#allocation6 + $0x110] sm:$0xf0]  ;;  %v1464_v43 = vld [vmem:[#allocation6 + $0x9c] sm:$0xf0]  ;;  %v1635_v48 = vor.u32 %v1796_v38, %v1632_v39 }
  0x3d   : > { %802 = vmatpush.bf16.msra.mxu0 %v1451_v21  ;;  %871 = vmatpush.bf16.msra.mxu1 %v1659_v23  ;;  %v1467_v44 = vor.u32 %v1754_v40, %v1464_v43  ;;  %v1414_v46 = vld [vmem:[#allocation6 + $0x30] sm:$0xf]  ;;  %v1743_v47 = vld [vmem:[#allocation6 + $0x38] sm:$0xf0]  ;;  %v1793_v49 = vld [vmem:[#allocation6 + $0x1cc] sm:$0xf]  ;;  %v1523_v50 = vor.u32 %v1770_v42, %v1522_v41 }
  0x3e   : > { %816 = vmatpush.bf16.msra.mxu2 %v1547_v24  ;;  %842 = vmatpush.bf16.msra.mxu3 %v1479_v36  ;;  %v1620_v51 = vld [vmem:[#allocation6 + $0x1d4] sm:$0xf0]  ;;  %v1751_v52 = vld [vmem:[#allocation6 + $0x7c] sm:$0xf]  ;;  %v1452_v53 = vld [vmem:[#allocation6 + $0x84] sm:$0xf0]  ;;  %v1415_v58 = vor.u32 %v1743_v47, %v1414_v46 }
  0x3f   : > { %v1510_v54 = vld [vmem:[#allocation6 + $0xf0] sm:$0xf]  ;;  %v1767_v55 = vld [vmem:[#allocation6 + $0xf8] sm:$0xf0]  ;;  %v1455_v56 = vor.u32 %v1751_v52, %v1452_v53  ;;  %v1748_v57 = vld [vmem:[#allocation6 + $0x64] sm:$0xf]  ;;  %v1623_v60 = vor.u32 %v1793_v49, %v1620_v51 }
  0x40   : > { %v1402_v59 = vld [vmem:[#allocation6 + $0x18] sm:$0xf]  ;;  %v1440_v61 = vld [vmem:[#allocation6 + $0x6c] sm:$0xf0]  ;;  %v1511_v62 = vor.u32 %v1767_v55, %v1510_v54  ;;  %v1740_v63 = vld [vmem:[#allocation6 + $0x20] sm:$0xf0] }
  0x41   : > { %803 = vmatpush.bf16.msra.mxu0 %v1439_v32  ;;  %872 = vmatpush.bf16.msra.mxu1 %v1647_v35  ;;  %v1790_v0 = vld [vmem:[#allocation6 + $0x1b4] sm:$0xf]  ;;  %v1608_v1 = vld [vmem:[#allocation6 + $0x1bc] sm:$0xf0]  ;;  %v1498_v2 = vld [vmem:[#allocation6 + $0xd8] sm:$0xf]  ;;  %v1443_v4 = vor.u32 %v1748_v57, %v1440_v61  ;;  %v1403_v7 = vor.u32 %v1740_v63, %v1402_v59 }
  0x42   : > { %817 = vmatpush.bf16.msra.mxu2 %v1535_v37  ;;  %843 = vmatpush.bf16.msra.mxu3 %v1467_v44  ;;  %v1764_v3 = vld [vmem:[#allocation6 + $0xe0] sm:$0xf0]  ;;  %v1745_v5 = vld [vmem:[#allocation6 + $0x4c] sm:$0xf]  ;;  %v1428_v6 = vld [vmem:[#allocation6 + $0x54] sm:$0xf0]  ;;  %v1611_v11 = vor.u32 %v1790_v0, %v1608_v1 }
  0x43   : > { %v1390_v8 = vld [vmem:[#allocation6] sm:$0xf]  ;;  %v1737_v9 = vld [vmem:[#allocation6 + $0x8] sm:$0xf0]  ;;  %v1499_v12 = vor.u32 %v1764_v3, %v1498_v2  ;;  %v1787_v14 = vld [vmem:[#allocation6 + $0x19c] sm:$0xf]  ;;  %v1431_v19 = vor.u32 %v1745_v5, %v1428_v6 }
  0x44   : > { %v1486_v10 = vld [vmem:[#allocation6 + $0xc0] sm:$0xf]  ;;  %v1761_v13 = vld [vmem:[#allocation6 + $0xc8] sm:$0xf0]  ;;  %v1596_v15 = vld [vmem:[#allocation6 + $0x1a4] sm:$0xf0]  ;;  %v1391_v23 = vor.u32 %v1737_v9, %v1390_v8 }
  0x45   : > { %804 = vmatpush.bf16.msra.mxu0 %v1427_v45  ;;  %873 = vmatpush.bf16.msra.mxu1 %v1635_v48  ;;  %v1666_v16 = vld [vmem:[#allocation6 + $0x228] sm:$0xf]  ;;  %v1781_v17 = vld [vmem:[#allocation6 + $0x16c] sm:$0xf]  ;;  %v1572_v18 = vld [vmem:[#allocation6 + $0x174] sm:$0xf0]  ;;  %v1599_v24 = vor.u32 %v1787_v14, %v1596_v15  ;;  %v1487_v28 = vor.u32 %v1761_v13, %v1486_v10 }
  0x46   : > { %818 = vmatpush.bf16.msra.mxu2 %v1523_v50  ;;  %844 = vmatpush.bf16.msra.mxu3 %v1455_v56  ;;  %v1806_v20 = vld [vmem:[#allocation6 + $0x230] sm:$0xf0]  ;;  %v1416_v22 = vld [vmem:[#allocation6 + $0x3c] sm:$0xf0]  ;;  %v1784_v25 = vld [vmem:[#allocation6 + $0x184] sm:$0xf]  ;;  %v1575_v29 = vor.u32 %v1781_v17, %v1572_v18 }
  0x47   : > { %v1742_v21 = vld [vmem:[#allocation6 + $0x34] sm:$0xf]  ;;  %v1378_v26 = vld [vmem:[%s2335_s7] sm:$0xf]  ;;  %v1380_v32 = vld [vmem:[%s2335_s7 + $0xc] sm:$0xf0]  ;;  %v1667_v33 = vor.u32 %v1806_v20, %v1666_v16 }
  0x48   : > { %v1734_v27 = vld [vmem:[%s2335_s7 + $0x8] sm:$0xf0]  ;;  %v1584_v30 = vld [vmem:[#allocation6 + $0x18c] sm:$0xf0]  ;;  %v1733_v31 = vld [vmem:[%s2335_s7 + $0x4] sm:$0xf]  ;;  %v1419_v37 = vor.u32 %v1742_v21, %v1416_v22 }
  0x49   : > { %805 = vmatpush.bf16.msra.mxu0 %v1415_v58  ;;  %874 = vmatpush.bf16.msra.mxu1 %v1623_v60  ;;  %v1654_v34 = vld [vmem:[#allocation6 + $0x210] sm:$0xf]  ;;  %v1778_v35 = vld [vmem:[#allocation6 + $0x154] sm:$0xf]  ;;  %v1560_v36 = vld [vmem:[#allocation6 + $0x15c] sm:$0xf0]  ;;  %v2353_v39 = vor.u32 %v1734_v27, %v1378_v26  ;;  %v1587_v42 = vor.u32 %v1784_v25, %v1584_v30  ;;  %v2355_v43 = vor.u32 %v1733_v31, %v1380_v32 }
  0x4a   : > { %819 = vmatpush.bf16.msra.mxu2 %v1511_v62  ;;  %845 = vmatpush.bf16.msra.mxu3 %v1443_v4  ;;  %v1803_v38 = vld [vmem:[#allocation6 + $0x218] sm:$0xf0]  ;;  %v1404_v41 = vld [vmem:[#allocation6 + $0x24] sm:$0xf0]  ;;  %v1563_v44 = vor.u32 %v1778_v35, %v1560_v36  ;;  %v1642_v45 = vld [vmem:[#allocation6 + $0x1f8] sm:$0xf] }
  0x4b   : > { %v1739_v40 = vld [vmem:[#allocation6 + $0x1c] sm:$0xf]  ;;  %v1655_v47 = vor.u32 %v1803_v38, %v1654_v34  ;;  %v1800_v48 = vld [vmem:[#allocation6 + $0x200] sm:$0xf0]  ;;  %v1548_v50 = vld [vmem:[#allocation6 + $0x144] sm:$0xf0] }
  0x4c   : > { %v1818_v46 = vld [vmem:[#allocation8 + $0x38] sm:$0xff]  ;;  %v1407_v51 = vor.u32 %v1739_v40, %v1404_v41  ;;  %v1736_v52 = vld [vmem:[#allocation6 + $0x4] sm:$0xf]  ;;  %v1392_v53 = vld [vmem:[#allocation6 + $0xc] sm:$0xf0]  ;;  %v1643_v61 = vor.u32 %v1800_v48, %v1642_v45  ;;  %s1375_s1 = sshll.u32 %s2331_s13, 4 }
  0x4d   : > { %806 = vmatpush.bf16.msra.mxu0 %v1403_v7  ;;  %875 = vmatpush.bf16.msra.mxu1 %v1611_v11  ;;  %v1775_v49 = vld [vmem:[#allocation6 + $0x13c] sm:$0xf]  ;;  %v1386_v54 = vld [vmem:[%s2335_s7 + $0x8] sm:$0xf]  ;;  %v1772_v62 = vld [vmem:[#allocation6 + $0x124] sm:$0xf]  ;;  %v1395_v0 = vor.u32 %v1736_v52, %v1392_v53 }
  0x4e   : > { %820 = vmatpush.bf16.msra.mxu2 %v1499_v12  ;;  %846 = vmatpush.bf16.msra.mxu3 %v1431_v19  ;;  %v1578_v55 = vld [vmem:[#allocation6 + $0x170] sm:$0xf]  ;;  %v1783_v56 = vld [vmem:[#allocation6 + $0x178] sm:$0xf0]  ;;  %v1551_v58 = vor.u32 %v1775_v49, %v1548_v50  ;;  %v1630_v1 = vld [vmem:[#allocation6 + $0x1e0] sm:$0xf] }
  0x4f   : > { %v1735_v57 = vld [vmem:[%s2335_s7 + $0x10] sm:$0xf0]  ;;  %v1817_v59 = vld [vmem:[#allocation8 + $0x30] sm:$0xff]  ;;  %v1797_v2 = vld [vmem:[#allocation6 + $0x1e8] sm:$0xf0]  ;;  %v1579_v3 = vor.u32 %v1783_v56, %v1578_v55  ;;  %s1819_s23 = sshll.u32 %s2170_s18, 4 }
  0x50   : > { %v2361_v60 = vor.u32 %v1735_v57, %v1386_v54  ;;  %v1536_v63 = vld [vmem:[#allocation6 + $0x12c] sm:$0xf0]  ;;  %v1566_v4 = vld [vmem:[#allocation6 + $0x158] sm:$0xf]  ;;  %v1780_v5 = vld [vmem:[#allocation6 + $0x160] sm:$0xf0]  ;;  %v1631_v8 = vor.u32 %v1797_v2, %v1630_v1  ;;  %s1243_s12 = scalar_lea.hbm %s2512_s4, %s1819_s23 }
  0x51   : > { %807 = vmatpush.bf16.msra.mxu0 %v1391_v23  ;;  %876 = vmatpush.bf16.msra.mxu1 %v1599_v24  ;;  %v1539_v6 = vor.u32 %v1772_v62, %v1536_v63  ;;  %v1816_v7 = vld [vmem:[#allocation8 + $0x28] sm:$0xff]  ;;  %v1524_v10 = vld [vmem:[#allocation6 + $0x114] sm:$0xf0]  ;;  %v1794_v12 = vld [vmem:[#allocation6 + $0x1d0] sm:$0xf0]  ;;  %v1567_v13 = vor.u32 %v1780_v5, %v1566_v4  ;;  %s294_s14 = scalar_lea.vmem [#allocation11], %s1375_s1 }
  0x52   : > { %821 = vmatpush.bf16.msra.mxu2 %v1487_v28  ;;  %847 = vmatpush.bf16.msra.mxu3 %v1419_v37  ;;  %v1769_v9 = vld [vmem:[#allocation6 + $0x10c] sm:$0xf]  ;;  %v1618_v11 = vld [vmem:[#allocation6 + $0x1c8] sm:$0xf]  ;;  %v1554_v14 = vld [vmem:[#allocation6 + $0x140] sm:$0xf] }
  0x53   : > { %v1777_v15 = vld [vmem:[#allocation6 + $0x148] sm:$0xf0]  ;;  %v1527_v16 = vor.u32 %v1769_v9, %v1524_v10  ;;  %v1815_v17 = vld [vmem:[#allocation8 + $0x20] sm:$0xff]  ;;  %v1619_v18 = vor.u32 %v1794_v12, %v1618_v11  ;;  %v1606_v19 = vld [vmem:[#allocation6 + $0x1b0] sm:$0xf]  ;;  %s1244_s18 = sshll.u32 %s294_s14, 4  ;;  %s1245_s18 = int_to_ptr.vmem [resolvable:$true] %s1244_s18 }
  0x54   : > { %808 = vmatmul.bf16.vlgmr.msra.gmra.mxu0 %v2353_v39  ;;  %v1766_v20 = vld [vmem:[#allocation6 + $0xf4] sm:$0xf]  ;;  %v1512_v21 = vld [vmem:[#allocation6 + $0xfc] sm:$0xf0]  ;;  %v1791_v22 = vld [vmem:[#allocation6 + $0x1b8] sm:$0xf0]  ;;  %v1555_v23 = vor.u32 %v1777_v15, %v1554_v14 }
  0x55   : > { %856 = vmatpush.bf16.msrb.mxu0 %v1575_v29  ;;  %877 = vmatpush.bf16.msra.mxu1 %v1587_v42  ;;  %v300_v24 = vld [vmem:[%s2335_s7] sm:$0xff]  ;;  %v302_v25 = vld [vmem:[%s2335_s7 + $0xc] sm:$0xff]  ;;  %v1515_v28 = vor.u32 %v1766_v20, %v1512_v21  ;;  %v1607_v30 = vor.u32 %v1791_v22, %v1606_v19  ;;  %v1788_v34 = vld [vmem:[#allocation6 + $0x1a0] sm:$0xf0]  ;;  %s1246_s28 = sshll.u32 %s1243_s12, 4  ;;  %s1231_s5 = scalar_lea.sflag [#allocation5], %s2331_s13  ;;  %s1247_s28 = int_to_ptr.hbm [resolvable:$true] %s1246_s28 }
  0x56   : > { %828 = vmatpush.bf16.msrb.mxu2 %v1667_v33  ;;  %848 = vmatpush.bf16.msra.mxu3 %v1407_v51  ;;  %v1542_v26 = vld [vmem:[#allocation6 + $0x128] sm:$0xf]  ;;  %v1774_v27 = vld [vmem:[#allocation6 + $0x130] sm:$0xf0]  ;;  %926 = vst [vmem:[#allocation2] sm:$0xf] %v300_v24 }
  0x57   : > { %822 = vmatmul.bf16.vlgmr.msra.gmra.mxu2 %v2355_v43  ;;  %v1814_v29 = vld [vmem:[#allocation8 + $0x18] sm:$0xff]  ;;  %927 = vst [vmem:[#allocation2 + $0x4] sm:$0xf] %v302_v25  ;;  %v1500_v32 = vld [vmem:[#allocation6 + $0xe4] sm:$0xf0]  ;;  %v1543_v35 = vor.u32 %v1774_v27, %v1542_v26  ;;  %v1813_v42 = vld [vmem:[#allocation8 + $0x10] sm:$0xff] }
  0x58   : > { %878 = vmatmul.bf16.vlgmr.msra.gmra.mxu1 %v2361_v60  ;;  %v1763_v31 = vld [vmem:[#allocation6 + $0xdc] sm:$0xf]  ;;  %v1594_v33 = vld [vmem:[#allocation6 + $0x198] sm:$0xf]  ;;  %v1530_v36 = vld [vmem:[#allocation6 + $0x110] sm:$0xf] }
  0x59   : > { %857 = vmatpush.bf16.msrb.mxu0 %v1563_v44  ;;  %1024 = vmatpush.bf16.msrb.mxu1 %v1818_v46  ;;  %v1771_v37 = vld [vmem:[#allocation6 + $0x118] sm:$0xf0]  ;;  %v1503_v38 = vor.u32 %v1763_v31, %v1500_v32  ;;  %v1582_v40 = vld [vmem:[#allocation6 + $0x180] sm:$0xf]  ;;  %v1785_v41 = vld [vmem:[#allocation6 + $0x188] sm:$0xf0]  ;;  %v1595_v46 = vor.u32 %v1788_v34, %v1594_v33 }
  0x5a   : > { %829 = vmatpush.bf16.msrb.mxu2 %v1655_v47  ;;  %849 = vmatpush.bf16.msra.mxu3 %v1395_v0  ;;  %v928_v44 = vrot.slane %v300_v24, 4  ;;  %v929_v45 = vrot.slane %v302_v25, 4  ;;  %v1760_v47 = vld [vmem:[#allocation6 + $0xc4] sm:$0xf]  ;;  %v1488_v48 = vld [vmem:[#allocation6 + $0xcc] sm:$0xf0]  ;;  %v1531_v52 = vor.u32 %v1771_v37, %v1530_v36 }
  0x5b   : > { %v1482_v49 = vld [vmem:[#allocation6 + $0xb0] sm:$0xf]  ;;  %v1807_v51 = vld [vmem:[#allocation6 + $0x238] sm:$0xf0]  ;;  %v1518_v54 = vld [vmem:[#allocation6 + $0xf8] sm:$0xf]  ;;  %v1491_v56 = vor.u32 %v1760_v47, %v1488_v48 }
  0x5c   : > { %v1674_v50 = vld [vmem:[#allocation6 + $0x230] sm:$0xf]  ;;  %932 = vst [vmem:[#allocation2 + $0x8] sm:$0xf] %v928_v44  ;;  %v1759_v53 = vld [vmem:[#allocation6 + $0xb8] sm:$0xf0] }
  0x5d   : > { %858 = vmatpush.bf16.msrb.mxu0 %v1551_v58  ;;  %1025 = vmatpush.bf16.msrb.mxu1 %v1817_v59  ;;  %v1768_v55 = vld [vmem:[#allocation6 + $0x100] sm:$0xf0]  ;;  %v1812_v57 = vld [vmem:[#allocation8 + $0x8] sm:$0xff]  ;;  %933 = vst [vmem:[#allocation2 + $0xc] sm:$0xf] %v929_v45  ;;  %v1583_v58 = vor.u32 %v1785_v41, %v1582_v40  ;;  %v1675_v59 = vor.u32 %v1807_v51, %v1674_v50  ;;  %s2102_s24 = sshra.s32 %s1247_s28, 4  ;;  %s2103_s24 = int_to_ptr.hbm [resolvable:$true] %s2102_s24 }
  0x5e   : > { %830 = vmatpush.bf16.msrb.mxu2 %v1643_v61  ;;  %898 = vmatpush.bf16.msrb.mxu3 %v1579_v3  ;;  %v1483_v61 = vor.u32 %v1759_v53, %v1482_v49  ;;  %v1470_v62 = vld [vmem:[#allocation6 + $0x98] sm:$0xf]  ;;  %v1804_v0 = vld [vmem:[#allocation6 + $0x220] sm:$0xf0]  ;;  %v1519_v1 = vor.u32 %v1768_v55, %v1518_v54  ;;  %v1506_v3 = vld [vmem:[#allocation6 + $0xe0] sm:$0xf]  ;;  %p2109_p8 = scmp.lt.s32.totalorder %s2103_s24, %s2512_s4 }
  0x5f   : > { %850 = vmatmul.bf16.vlgmr.msra.gmra.mxu3 %v2353_v39  ;;  %v1662_v63 = vld [vmem:[#allocation6 + $0x218] sm:$0xf]  ;;  %v1756_v2 = vld [vmem:[#allocation6 + $0xa0] sm:$0xf0]  ;;  %v1765_v4 = vld [vmem:[#allocation6 + $0xe8] sm:$0xf0] }
  0x60   : > { %v1811_v5 = vld [vmem:[#allocation8] sm:$0xff]  ;;  %v301_v10 = vld [vmem:[%s2335_s7 + $0x8] sm:$0xf]  ;;  %v1471_v12 = vor.u32 %v1756_v2, %v1470_v62  ;;  %v1507_v14 = vor.u32 %v1765_v4, %v1506_v3  ;;  %v1494_v15 = vld [vmem:[#allocation6 + $0xc8] sm:$0xf]  ;;  %s2104_s29 = scalar_lea.hbm %s2103_s24, 16 }
  0x61   : > { %859 = vmatpush.bf16.msrb.mxu0 %v1539_v6  ;;  %1026 = vmatpush.bf16.msrb.mxu1 %v1816_v7  ;;  %v1663_v6 = vor.u32 %v1804_v0, %v1662_v63  ;;  %v1458_v7 = vld [vmem:[#allocation6 + $0x80] sm:$0xf]  ;;  %v303_v11 = vld [vmem:[%s2335_s7 + $0x14] sm:$0xf]  ;;  %934 = vst [vmem:[#allocation2 + $0x10] sm:$0xf] %v301_v10  ;;  %p2105_p1 = scmp.ne.s32.totalorder %s2103_s24, %s2104_s29 }
  0x62   : > { %831 = vmatpush.bf16.msrb.mxu2 %v1631_v8  ;;  %899 = vmatpush.bf16.msrb.mxu3 %v1567_v13  ;;  %v1753_v8 = vld [vmem:[#allocation6 + $0x88] sm:$0xf0]  ;;  %v1650_v9 = vld [vmem:[#allocation6 + $0x200] sm:$0xf]  ;;  %935 = vst [vmem:[#allocation2 + $0x14] sm:$0xf] %v303_v11 }
  0x63   : > { %v1801_v13 = vld [vmem:[#allocation6 + $0x208] sm:$0xf0]  ;;  %v1459_v19 = vor.u32 %v1753_v8, %v1458_v7  ;;  %v1638_v20 = vld [vmem:[#allocation6 + $0x1e8] sm:$0xf]  ;;  %v1798_v21 = vld [vmem:[#allocation6 + $0x1f0] sm:$0xf0]  ;;  %p2106_p2 = pnand %p2105_p1, %p2308_p3 }
  0x64   : > { %v1750_v24 = vld [vmem:[#allocation6 + $0x70] sm:$0xf0]  ;;  %v1639_v25 = vor.u32 %v1798_v21, %v1638_v20  ;;  %v1626_v27 = vld [vmem:[#allocation6 + $0x1d0] sm:$0xf]  ;;  %v1614_v33 = vld [vmem:[#allocation6 + $0x1b8] sm:$0xf] }
  0x65   : > { %860 = vmatpush.bf16.msrb.mxu0 %v1527_v16  ;;  %1027 = vmatpush.bf16.msrb.mxu1 %v1815_v17  ;;  %v1808_v16 = vld [vmem:[#allocation2] sm:$0xff]  ;;  %v1762_v17 = vld [vmem:[#allocation6 + $0xd0] sm:$0xf0]  ;;  %v1792_v34 = vld [vmem:[#allocation6 + $0x1c0] sm:$0xf0]  ;;  %p2107_p4 = pneg %p2106_p2  ;;  %s2108_s9 = scalar_lea.hbm %s2512_s4, 32 }
  0x66   : > { %832 = vmatpush.bf16.msrb.mxu2 %v1619_v18  ;;  %900 = vmatpush.bf16.msrb.mxu3 %v1555_v23  ;;  %v1651_v18 = vor.u32 %v1801_v13, %v1650_v9  ;;  %v1495_v22 = vor.u32 %v1762_v17, %v1494_v15  ;;  %v1446_v23 = vld [vmem:[#allocation6 + $0x68] sm:$0xf]  ;;  %v1744_v36 = vld [vmem:[#allocation6 + $0x40] sm:$0xf0]  ;;  %v1615_v37 = vor.u32 %v1792_v34, %v1614_v33  ;;  %v1602_v40 = vld [vmem:[#allocation6 + $0x1a0] sm:$0xf]  ;;  %p2110_p12 = scmp.lt.s32.totalorder %s2108_s9, %s2104_s29 }
  0x67   : > { %v1447_v26 = vor.u32 %v1750_v24, %v1446_v23  ;;  %v1789_v41 = vld [vmem:[#allocation6 + $0x1a8] sm:$0xf0]  ;;  %v1809_v45 = vld [vmem:[#allocation2 + $0x8] sm:$0xff]  ;;  %v1786_v48 = vld [vmem:[#allocation6 + $0x190] sm:$0xf0] }
  0x68   : > { %v1741_v44 = vld [vmem:[#allocation6 + $0x28] sm:$0xf0]  ;;  %v1398_v49 = vld [vmem:[#allocation6 + $0x8] sm:$0xf]  ;;  %v1738_v50 = vld [vmem:[#allocation6 + $0x10] sm:$0xf0]  ;;  %p2111_p13 = por %p2110_p12, %p2109_p8 }
  0x69   : > { %861 = vmatpush.bf16.msrb.mxu0 %v1515_v28  ;;  %1028 = vmatpush.bf16.msrb.mxu1 %v1814_v29  ;;  %v1795_v28 = vld [vmem:[#allocation6 + $0x1d8] sm:$0xf0]  ;;  %v1434_v29 = vld [vmem:[#allocation6 + $0x50] sm:$0xf]  ;;  %v1810_v53 = vld [vmem:[#allocation2 + $0x10] sm:$0xff] }
  0x6a   : > { %833 = vmatpush.bf16.msrb.mxu2 %v1607_v30  ;;  %901 = vmatpush.bf16.msrb.mxu3 %v1543_v35  ;;  %v1747_v30 = vld [vmem:[#allocation6 + $0x58] sm:$0xf0]  ;;  %v1627_v31 = vor.u32 %v1795_v28, %v1626_v27  ;;  %v1422_v35 = vld [vmem:[#allocation6 + $0x38] sm:$0xf]  ;;  %p2112_p0 = pnand %p2111_p13, %p2107_p4 }
  0x6b   : > { %v1435_v32 = vor.u32 %v1747_v30, %v1434_v29 }
  0x6d   : > { %862 = vmatpush.bf16.msrb.mxu0 %v1503_v38  ;;  %1029 = vmatpush.bf16.msrb.mxu1 %v1813_v42  ;;  %v1423_v38 = vor.u32 %v1744_v36, %v1422_v35  ;;  %v1410_v42 = vld [vmem:[#allocation6 + $0x20] sm:$0xf] }
  0x6e   : > { %834 = vmatpush.bf16.msrb.mxu2 %v1595_v46  ;;  %902 = vmatpush.bf16.msrb.mxu3 %v1531_v52  ;;  %v1603_v46 = vor.u32 %v1789_v41, %v1602_v40  ;;  %v1411_v47 = vor.u32 %v1741_v44, %v1410_v42  ;;  %v1399_v52 = vor.u32 %v1738_v50, %v1398_v49 }
  0x71   : > { %863 = vmatpush.bf16.msrb.mxu0 %v1491_v56  ;;  %1030 = vmatpush.bf16.msrb.mxu1 %v1812_v57 }
  0x72   : > { %835 = vmatpush.bf16.msrb.mxu2 %v1583_v58  ;;  %903 = vmatpush.bf16.msrb.mxu3 %v1519_v1 }
  0x74   : > { %864 = vmatmul.bf16.vlgmr.msrb.gmra.mxu0 %v2355_v43 }
  0x75   : > { %912 = vmatpush.bf16.msra.mxu0 %v1675_v59  ;;  %836 = vmatmul.bf16.vlgmr.msrb.gmra.mxu2 %v2361_v60 }
  0x76   : > { %884 = vmatpush.bf16.msra.mxu2 %v1483_v61  ;;  %1031 = vmatpush.bf16.msrb.mxu1 %v1811_v5 }
  0x77   : > { %904 = vmatpush.bf16.msrb.mxu3 %v1507_v14 }
  0x79   : > { %913 = vmatpush.bf16.msra.mxu0 %v1663_v6  ;;  %1032 = vmatmul.bf16.vlgmr.msrb.gmra.mxu1 %v1808_v16 }
  0x7a   : > { %885 = vmatpush.bf16.msra.mxu2 %v1471_v12 }
  0x7b   : > { %905 = vmatpush.bf16.msrb.mxu3 %v1495_v22 }
  0x7d   : > { %914 = vmatpush.bf16.msra.mxu0 %v1651_v18 }
  0x7e   : > { %886 = vmatpush.bf16.msra.mxu2 %v1459_v19  ;;  %906 = vmatmul.bf16.vlgmr.msrb.gmra.mxu3 %v2355_v43  ;;  %v1590_v43 = vld [vmem:[#allocation6 + $0x188] sm:$0xf] }
  0x7f   : > { %v1591_v51 = vor.u32 %v1786_v48, %v1590_v43 }
  0x81   : > { %915 = vmatpush.bf16.msra.mxu0 %v1639_v25 }
  0x82   : > { %887 = vmatpush.bf16.msra.mxu2 %v1447_v26 }
  0x85   : > { %916 = vmatpush.bf16.msra.mxu0 %v1627_v31 }
  0x86   : > { %888 = vmatpush.bf16.msra.mxu2 %v1435_v32 }
  0x89   : > { %917 = vmatpush.bf16.msra.mxu0 %v1615_v37  ;;  %1037 = vmatmul.bf16.gmra.mxu1 %v1809_v45 }
  0x8a   : > { %889 = vmatpush.bf16.msra.mxu2 %v1423_v38 }
  0x8d   : > { %918 = vmatpush.bf16.msra.mxu0 %v1603_v46 }
  0x8e   : > { %890 = vmatpush.bf16.msra.mxu2 %v1411_v47 }
  0x91   : > { %919 = vmatpush.bf16.msra.mxu0 %v1591_v51 }
  0x92   : > { %891 = vmatpush.bf16.msra.mxu2 %v1399_v52 }
  0x94   : > { %920 = vmatmul.bf16.vlgmr.msra.gmra.mxu0 %v2361_v60 }
  0x95   : > { %892 = vmatmul.bf16.vlgmr.msra.gmra.mxu2 %v2353_v39 }
  0x99   : > { %1042 = vmatmul.bf16.gmra.mxu1 %v1810_v53 }
  0xd1   : > { %v809_v54 = vpop.f32.mrf.mxu0 }
  0xd5   : > { %v879_v58 = vpop.f32.mrf.mxu1 }
  0xd9   : > { %v811_v56 = vpop.f32.mrf.mxu0 }
  0xda   : > { %v823_v55 = vpop.f32.mrf.mxu2 }
  0xdb   : > { %v824_v62 = vadd.f32 %v823_v55, %v809_v54 }
  0xdd   : > { %v881_v2 = vpop.f32.mrf.mxu1 }
  0xe2   : > { %v825_v57 = vpop.f32.mrf.mxu2  ;;  %v851_v59 = vpop.f32.mrf.mxu3 }
  0xe3   : > { %v826_v39 = vadd.f32 %v825_v57, %v811_v56 }
  0xea   : > { %v853_v4 = vpop.f32.mrf.mxu3 }
  0xf1   : > { %v865_v61 = vpop.f32.mrf.mxu0 }
  0xf2   : > { %v866_v0 = vadd.f32 %v865_v61, %v851_v59 }
  0xf4   : > { %v880_v3 = vadd.f32 %v879_v58, %v866_v0 }
  0xf6   : > { %v1721_v7 = vmul.f32 -1.442695, %v880_v3  ;;  %v2374_v11 = vpop.f32.mrf.mxu1 }
  0xf8   : > { %v837_v63 = vpop.f32.mrf.mxu2 }
  0xf9   : > { %v838_v1 = vadd.f32 %v837_v63, %v824_v62  ;;  %v867_v5 = vpop.f32.mrf.mxu0 }
  0xfa   : > { %v868_v8 = vadd.f32 %v867_v5, %v853_v4 }
  0xfb   : > { %v1720_v60 = vmul.f32 -1.442695, %v838_v1 }
  0xfc   : > { %v882_v10 = vadd.f32 %v881_v2, %v868_v8 }
  0xfd   : > { %1924 = vpow2.f32 %v1720_v60 }
  0xfe   : > { %1926 = vpow2.f32 %v1721_v7  ;;  %v1724_v14 = vmul.f32 -1.442695, %v882_v10  ;;  %v2379_v18 = vpop.f32.mrf.mxu1 }
 0x100   : > { %v839_v6 = vpop.f32.mrf.mxu2 }
 0x101   : > { %v840_v9 = vadd.f32 %v839_v6, %v826_v39  ;;  %v907_v21 = vpop.f32.mrf.mxu3  ;;  %v1054_v39 = vld [vmem:[#allocation9] sm:$0xff] }
 0x103   : > { %v1723_v12 = vmul.f32 -1.442695, %v840_v9  ;;  %v1925_v13 = vpop.eup %1924 }
 0x104   : > { %v1927_v15 = vpop.eup %1926  ;;  %v2376_v16 = vadd.f32 1.0, %v1925_v13  ;;  %v1055_v13 = vld [vmem:[#allocation9 + $0x8] sm:$0xff] }
 0x105   : > { %1928 = vpow2.f32 %v1723_v12  ;;  %v1079_v17 = vadd.f32 1.0, %v1927_v15 }
 0x106   : > { %1930 = vpow2.f32 %v1724_v14  ;;  %v1038_v31 = vpop.f32.mrf.mxu1  ;;  %v1095_v54 = vand.u32 2147483648, %v2376_v16  ;;  %vm1089_vm3 = vweird.f32 %v2376_v16  ;;  %v1093_v58 = vand.u32 2147483647, %v2376_v16 }
 0x107   : > { %1932 = vrcp.f32 %v2376_v16  ;;  %vm1104_vm0 = vweird.f32 %v1079_v17  ;;  %v1108_v55 = vand.u32 2147483647, %v1079_v17  ;;  %v1110_v56 = vand.u32 2147483648, %v1079_v17 }
 0x108   : > { %1934 = vrcp.f32 %v1079_v17  ;;  %v1096_v1 = vor.u32 1.1754944e-38, %v1095_v54  ;;  %vm1094_vm7 = vcmp.eq.f32.partialorder %v1093_v58, 8.507059e+37 }
 0x109   : > { %v909_v35 = vpop.f32.mrf.mxu3  ;;  %vm2417_vm6 = vcmp.eq.f32.partialorder %v1108_v55, 8.507059e+37  ;;  %v1111_v3 = vor.u32 1.1754944e-38, %v1110_v56 }
 0x10b   : > { %v1929_v19 = vpop.eup %1928 }
 0x10c   : > { %v1931_v20 = vpop.eup %1930  ;;  %v2381_v22 = vadd.f32 1.0, %v1929_v19 }
 0x10d   : > { %v1933_v25 = vpop.eup %1932  ;;  %v2383_v26 = vadd.f32 1.0, %v1931_v20 }
 0x10e   : > { %v2385_v28 = vpop.eup %1934  ;;  %1936 = vrcp.f32 %v2381_v22  ;;  %v1085_v30 = vmul.f32 %v1933_v25, %v2376_v16  ;;  %v2403_v51 = vpop.f32.mrf.mxu1  ;;  %vm1090_vm2 = vweird.f32 %v1933_v25  ;;  %vm1134_vm8 = vweird.f32 %v2381_v22 }
 0x10f   : > { %1938 = vrcp.f32 %v2383_v26  ;;  %v1100_v33 = vmul.f32 %v2385_v28, %v1079_v17  ;;  %vm1105_vm1 = vweird.f32 %v2385_v28  ;;  %vm1091_vm5 = vmor %vm1089_vm3, %vm1090_vm2  ;;  %v1140_v12 = vand.u32 2147483648, %v2381_v22 }
 0x110   : > { %v1086_v34 = vsub.f32 1.0, %v1085_v30  ;;  %vm2411_vm4 = vmor %vm1104_vm0, %vm1105_vm1  ;;  %vm1149_vm13 = vweird.f32 %v2383_v26  ;;  %v1153_v30 = vand.u32 2147483647, %v2383_v26 }
 0x111   : > { %v921_v23 = vpop.f32.mrf.mxu0  ;;  %v1101_v40 = vsub.f32 1.0, %v1100_v33 }
 0x112   : > { %v1087_v45 = vmul.f32 %v1933_v25, %v1086_v34  ;;  %vm1154_vm3 = vcmp.eq.f32.partialorder %v1153_v30, 8.507059e+37 }
 0x113   : > { %v1102_v49 = vmul.f32 %v2385_v28, %v1101_v40 }
 0x114   : > { %v2391_v37 = vpop.eup %1936  ;;  %v1088_v52 = vadd.f32 %v1933_v25, %v1087_v45 }
 0x115   : > { %v2393_v42 = vpop.eup %1938  ;;  %v1130_v46 = vmul.f32 %v2391_v37, %v2381_v22  ;;  %v1103_v59 = vadd.f32 %v2385_v28, %v1102_v49  ;;  %vm1135_vm9 = vweird.f32 %v2391_v37 }
 0x116   : > { %v1145_v48 = vmul.f32 %v2393_v42, %v2383_v26  ;;  %v1092_v62 = vsel %vm1091_vm5, %v1933_v25, %v1088_v52  ;;  %v1043_v9 = vpop.f32.mrf.mxu1  ;;  %vm1150_vm10 = vweird.f32 %v2393_v42  ;;  %vm2442_vm11 = vmor %vm1134_vm8, %vm1135_vm9  ;;  %v1058_v52 = vld [vmem:[#allocation9 + $0x20] sm:$0xff] }
 0x117   : > { %v1131_v53 = vsub.f32 1.0, %v1130_v46  ;;  %v1107_v5 = vsel %vm2411_vm4, %v2385_v28, %v1103_v59  ;;  %v1097_v7 = vsel %vm1094_vm7, %v1096_v1, %v1092_v62  ;;  %v1155_v28 = vand.u32 2147483648, %v2383_v26  ;;  %vm2454_vm14 = vmor %vm1149_vm13, %vm1150_vm10  ;;  %v1059_v62 = vld [vmem:[#allocation9 + $0x28] sm:$0xff] }
 0x118   : > { %v893_v24 = vpop.f32.mrf.mxu2  ;;  %v1146_v57 = vsub.f32 1.0, %v1145_v48  ;;  %v1112_v14 = vsel %vm2417_vm6, %v1111_v3, %v1107_v5  ;;  %v1174_v16 = vmul.f32 %v1097_v7, %v1054_v39 }
 0x119   : > { %v908_v27 = vadd.f32 %v907_v21, %v893_v24  ;;  %v923_v41 = vpop.f32.mrf.mxu0  ;;  %v1132_v63 = vmul.f32 %v2391_v37, %v1131_v53  ;;  %v1156_v45 = vor.u32 1.1754944e-38, %v1155_v28 }
 0x11a   : > { %v1147_v60 = vmul.f32 %v2393_v42, %v1146_v57 }
 0x11b   : > { %v922_v29 = vadd.f32 %v921_v23, %v908_v27  ;;  %v1133_v10 = vadd.f32 %v2391_v37, %v1132_v63  ;;  %v1175_v27 = vmul.f32 %v1112_v14, %v1055_v13 }
 0x11c   : > { %v1148_v17 = vadd.f32 %v2393_v42, %v1147_v60 }
 0x11d   : > { %v1722_v32 = vmul.f32 -1.442695, %v922_v29  ;;  %v1137_v25 = vsel %vm2442_vm11, %v2391_v37, %v1133_v10  ;;  %v1141_v29 = vor.u32 1.1754944e-38, %v1140_v12  ;;  %v1057_v37 = vld [vmem:[#allocation9 + $0x18] sm:$0xff] }
 0x11e   : > { %v1152_v34 = vsel %vm2454_vm14, %v2393_v42, %v1148_v17  ;;  %v1045_v48 = vpop.f32.mrf.mxu1 }
 0x11f   : > { %1940 = vpow2.f32 %v1722_v32  ;;  %v1157_v53 = vsel %vm1154_vm3, %v1156_v45, %v1152_v34 }
 0x120   : > { %v895_v36 = vpop.f32.mrf.mxu2 }
 0x121   : > { %v910_v38 = vadd.f32 %v909_v35, %v895_v36  ;;  %v1056_v35 = vld [vmem:[#allocation9 + $0x10] sm:$0xff] }
 0x123   : > { %v924_v44 = vadd.f32 %v923_v41, %v910_v38 }
 0x125   : > { %v1941_v47 = vpop.eup %1940  ;;  %v1725_v43 = vmul.f32 -1.442695, %v924_v44 }
 0x126   : > { %v2400_v50 = vadd.f32 1.0, %v1941_v47 }
 0x127   : > { %1942 = vpow2.f32 %v1725_v43 }
 0x128   : > { %1944 = vrcp.f32 %v2400_v50  ;;  %v1125_v19 = vand.u32 2147483648, %v2400_v50  ;;  %v1123_v24 = vand.u32 2147483647, %v2400_v50  ;;  %vm1119_vm15 = vweird.f32 %v2400_v50 }
 0x129   : > { %1946 = vtanh.f32 %v2374_v11  ;;  %v1138_v11 = vand.u32 2147483647, %v2381_v22 }
 0x12a   : > { %1948 = vtanh.f32 %v1038_v31  ;;  %v1126_v36 = vor.u32 1.1754944e-38, %v1125_v19  ;;  %vm1124_vm2 = vcmp.eq.f32.partialorder %v1123_v24, 8.507059e+37 }
 0x12b   : > { %vm1139_vm0 = vcmp.eq.f32.partialorder %v1138_v11, 8.507059e+37 }
 0x12c   : > { %v1142_v38 = vsel %vm1139_vm0, %v1141_v29, %v1137_v25 }
 0x12d   : > { %v1943_v0 = vpop.eup %1942  ;;  %v1177_v49 = vmul.f32 %v1142_v38, %v1057_v37 }
 0x12e   : > { %v1945_v4 = vpop.eup %1944  ;;  %v2425_v6 = vadd.f32 1.0, %v1943_v0 }
 0x12f   : > { %v1115_v8 = vmul.f32 %v1945_v4, %v2400_v50  ;;  %v1947_v20 = vpop.eup %1946  ;;  %vm1120_vm12 = vweird.f32 %v1945_v4 }
 0x130   : > { %1950 = vrcp.f32 %v2425_v6  ;;  %v1180_v33 = vmul.f32 %v1947_v20, %v1174_v16  ;;  %vm1121_vm1 = vmor %vm1119_vm15, %vm1120_vm12  ;;  %v1170_v54 = vand.u32 2147483648, %v2425_v6  ;;  %v1168_v57 = vand.u32 2147483647, %v2425_v6 }
 0x131   : > { %v1116_v15 = vsub.f32 1.0, %v1115_v8  ;;  %1952 = vtanh.f32 %v1043_v9  ;;  %vm1164_vm5 = vweird.f32 %v2425_v6 }
 0x132   : > { %1954 = vtanh.f32 %v2379_v18  ;;  %v1949_v18 = vpop.eup %1948  ;;  %v1171_v63 = vor.u32 1.1754944e-38, %v1170_v54  ;;  %vm1169_vm7 = vcmp.eq.f32.partialorder %v1168_v57, 8.507059e+37 }
 0x133   : > { %v1117_v23 = vmul.f32 %v1945_v4, %v1116_v15  ;;  %v1182_v44 = vmul.f32 %v1949_v18, %v1175_v27  ;;  %1956 = vtanh.f32 %v2403_v51  ;;  %v1178_v51 = vmul.f32 %v1157_v53, %v1058_v52 }
 0x134   : > { %1958 = vtanh.f32 %v1045_v48 }
 0x135   : > { %v1118_v31 = vadd.f32 %v1945_v4, %v1117_v23  ;;  %v1184_v50 = vadd.f32 %v1182_v44, %v1180_v33 }
 0x136   : > { %v1951_v32 = vpop.eup %1950 }
 0x137   : > { %v1160_v40 = vmul.f32 %v1951_v32, %v2425_v6  ;;  %v1122_v41 = vsel %vm1121_vm1, %v1945_v4, %v1118_v31  ;;  %v1953_v26 = vpop.eup %1952  ;;  %vm1165_vm4 = vweird.f32 %v1951_v32 }
 0x138   : > { %v1127_v46 = vsel %vm1124_vm2, %v1126_v36, %v1122_v41  ;;  %v1955_v47 = vpop.eup %1954  ;;  %vm1166_vm6 = vmor %vm1164_vm5, %vm1165_vm4 }
 0x139   : > { %v1161_v43 = vsub.f32 1.0, %v1160_v40  ;;  %v1176_v42 = vmul.f32 %v1127_v46, %v1056_v35  ;;  %v1957_v61 = vpop.eup %1956  ;;  %v1181_v0 = vmul.f32 %v1955_v47, %v1177_v49 }
 0x13a   : > { %v1183_v4 = vmul.f32 %v1957_v61, %v1178_v51  ;;  %v1959_v60 = vpop.eup %1958 }
 0x13b   : > { %v1186_v55 = vmul.f32 %v1953_v26, %v1176_v42  ;;  %v1162_v56 = vmul.f32 %v1951_v32, %v1161_v43 }
 0x13c   : > { %v1185_v39 = vadd.f32 %v1183_v4, %v1181_v0 }
 0x13d   : > { %v1188_v58 = vadd.f32 %v1186_v55, %v1184_v50  ;;  %v1163_v59 = vadd.f32 %v1951_v32, %v1162_v56 }
 0x13f   : > { %v1726_v1 = vmul.f32 -1.442695, %v1188_v58  ;;  %v1167_v2 = vsel %vm1166_vm6, %v1951_v32, %v1163_v59 }
 0x140   : > { %v1172_v3 = vsel %vm1169_vm7, %v1171_v63, %v1167_v2 }
 0x141   : > { %1960 = vpow2.f32 %v1726_v1  ;;  %v1179_v5 = vmul.f32 %v1172_v3, %v1059_v62 }
 0x143   : > { %v1187_v7 = vmul.f32 %v1959_v60, %v1179_v5 }
 0x145   : > { %v1189_v8 = vadd.f32 %v1187_v7, %v1185_v39 }
 0x147   : > { %v1961_v9 = vpop.eup %1960  ;;  %v1727_v10 = vmul.f32 -1.442695, %v1189_v8 }
 0x148   : > { %v1196_v6 = vadd.f32 1.0, %v1961_v9 }
 0x149   : > { %1962 = vpow2.f32 %v1727_v10 }
 0x14a   : > { %1964 = vrcp.f32 %v1196_v6  ;;  %v1209_v16 = vand.u32 2147483648, %v1196_v6  ;;  %v1207_v19 = vand.u32 2147483647, %v1196_v6  ;;  %vm1203_vm9 = vweird.f32 %v1196_v6 }
 0x14c   : > { %v1210_v23 = vor.u32 1.1754944e-38, %v1209_v16  ;;  %vm1208_vm11 = vcmp.eq.f32.partialorder %v1207_v19, 8.507059e+37 }
 0x14f   : > { %v1963_v11 = vpop.eup %1962 }
 0x150   : > { %v1965_v12 = vpop.eup %1964  ;;  %v1197_v13 = vadd.f32 1.0, %v1963_v11 }
 0x151   : > { %v1199_v14 = vmul.f32 %v1965_v12, %v1196_v6  ;;  %vm1204_vm8 = vweird.f32 %v1965_v12 }
 0x152   : > { %1966 = vrcp.f32 %v1197_v13  ;;  %vm1205_vm10 = vmor %vm1203_vm9, %vm1204_vm8  ;;  %v1224_v18 = vand.u32 2147483648, %v1197_v13  ;;  %v1222_v22 = vand.u32 2147483647, %v1197_v13  ;;  %vm1218_vm13 = vweird.f32 %v1197_v13 }
 0x153   : > { %v1200_v15 = vsub.f32 1.0, %v1199_v14 }
 0x154   : > { %v1225_v31 = vor.u32 1.1754944e-38, %v1224_v18  ;;  %vm1223_vm15 = vcmp.eq.f32.partialorder %v1222_v22, 8.507059e+37 }
 0x155   : > { %v1201_v17 = vmul.f32 %v1965_v12, %v1200_v15 }
 0x157   : > { %v1202_v20 = vadd.f32 %v1965_v12, %v1201_v17 }
 0x158   : > { %v1967_v21 = vpop.eup %1966 }
 0x159   : > { %v1214_v24 = vmul.f32 %v1967_v21, %v1197_v13  ;;  %v1206_v25 = vsel %vm1205_vm10, %v1965_v12, %v1202_v20  ;;  %vm1219_vm12 = vweird.f32 %v1967_v21 }
 0x15a   : > { %v1211_v27 = vsel %vm1208_vm11, %v1210_v23, %v1206_v25  ;;  %vm1220_vm14 = vmor %vm1218_vm13, %vm1219_vm12 }
 0x15b   : > { %v1215_v28 = vsub.f32 1.0, %v1214_v24  ;;  %1228 = vst [vmem:[%s294_s14] sm:$0xff] %v1211_v27 }
 0x15d   : > { %v1216_v29 = vmul.f32 %v1967_v21, %v1215_v28 }
 0x15f   : > { %v1217_v30 = vadd.f32 %v1967_v21, %v1216_v29 }
 0x161   : > { %v1221_v32 = vsel %vm1220_vm14, %v1967_v21, %v1217_v30 }
 0x162   : > { %v1226_v33 = vsel %vm1223_vm15, %v1225_v31, %v1221_v32 }
 0x163   : > { %1229 = vst [vmem:[%s294_s14 + $0x8] sm:$0xff] %v1226_v33 }
 0x164   : > { %2115 = shalt.err (!%p2112_p0)
}
 0x165   : > { %s2189_s13 = smov 128   ;;  %s2190_s7 = smov 8  }
 0x166   : > { %1837 = dma.vmem_to_hbm [thread:$0]  (%p2308_p3), %s1245_s18, 256, %s1247_s28, %s1231_s5, %s2189_s13, %s2189_s13, %s2190_s7  }
 0x167 PF: > { %s1261_s1 = sand.u32 1, %s2158_s15   ;;  %p1854_p5 = pnand %p1367_p11, %p2265_p6 }
 0x168   : > { %s1262_s23 = scalar_lea.sflag [#allocation5], %s1261_s1 }
 0x169   : > { %p1855_p7 = pneg %p1854_p5 }
 0x16b   : > { %2153 = dma.done.wait (%p1855_p7), %s1262_s23, 256  }
 0x16c   : > { %2155 = vsyncadd (%p1855_p7), %s1262_s23, 4294967040  ;;  %s22_s20 = sadd.s32 1, %s2178_s20   ;;  %s2532_s15 = smov %s2162_s16 }
 0x16d   : > { %p19_p9 = scmp.ge.s32.totalorder %s22_s20, 4   ;;  %s2533_s16 = smov %s2166_s17 }
 0x16e   : > { %s2534_s17 = smov %s2320_s27  ;;  %s2535_s18 = smov %s2174_s19 }
 0x16f   : > { %s2536_s19 = smov %s2538_s11  ;;  %21 = sbr.rel (!%p19_p9) target bundleno = 10 (0xa), region = 94 }
 0x174   :  { %1268 = vsyncpa [#allocation4], 1 }
 0x175   :  { %1270 = vsyncpa [#allocation4 + $0x1], 1 }
 0x176   :  { %1271 = vsyncpa [#allocation7], 1 }
 0x177   :  { %1272 = vsyncpa [#allocation10], 1 }
 0x178   :  { %1273 = vsyncpa [#allocation5], 1 }
 0x179   :  { %1275 = vsyncpa [#allocation5 + $0x1], 1 }

</bundles_post_ra>
